<compile_context>
chip_gen: v7x
topology: tpu7x:2x2x1
jax: 0.10.0
libtpu: 0.0.40
codegen_flags: <defaults>
</compile_context>

<pallas_src>
import functools

import jax
import jax.numpy as jnp
from jax.experimental import pallas as pl
from jax.experimental.pallas import tpu as pltpu

NEG_SLOPE = 0.01  # torch.nn.LeakyReLU default


# ------------------------------- fused kernel --------------------------------------
def _fused_forward_kernel(p2_ref, w2_ref, b2_ref, w3_ref, b3_ref, w4_ref, b4_ref,
                          w5_ref, b5_ref, w6_ref, b6_ref, o_ref, *, nb, lf):
    def leaky(v):
        return jnp.where(v >= 0.0, v, NEG_SLOPE * v)

    def pool_lane_halves(y):
        # lanes are ordered [pool_branch | ...]; MaxPool1d(2) == max of the two lane halves.
        half = y.shape[1] // 2
        return jnp.maximum(y[:, :half], y[:, half:])

    # ---- block 2: Conv1d(6,6,4,s=4) (1x1-conv + BN1 + BN2 folded in) + LeakyReLU + MaxPool(2)
    x2 = p2_ref[...].astype(jnp.float32)              # (4, nb*L/4) lanes [e2|k3|e3|k4|e4|p4|n]
    y2 = jnp.dot(w2_ref[...], x2, preferred_element_type=jnp.float32) + b2_ref[...]
    o2 = pool_lane_halves(leaky(y2))                  # (6, nb*L/8)  lanes [k3|e3|k4|e4|p4|n]

    # ---- blocks 3 & 4: the 4 patch phases of the previous output are the 4 leading lane
    #      quarters (128-aligned slices); consume them as 4 small MXU dots.
    #      (NB: per review item 10, a VPU broadcast-mul-add chain is a possible alternative
    #       if the padded tiny matmuls ever dominate the bundle; keep MXU for clarity.)
    def conv_block(prev, w_ref, b_ref):
        q = prev.shape[1] // 4
        acc = jnp.dot(w_ref[0], prev[:, :q], preferred_element_type=jnp.float32)
        for k in range(1, 4):
            acc = acc + jnp.dot(w_ref[k], prev[:, k * q:(k + 1) * q],
                                preferred_element_type=jnp.float32)
        return pool_lane_halves(leaky(acc + b_ref[...]))

    o3 = conv_block(o2, w3_ref, b3_ref)               # (6, nb*L/64)  lanes [k4|e4|p4|n]
    o4 = conv_block(o3, w4_ref, b4_ref)               # (6, nb*Lf)    lanes [p4|n]

    # ---- head: Linear(6*Lf,16) (Flatten permutation folded into w5) + LeakyReLU
    #            + [BN5 folded into w6/b6] + Linear(16,1) + Sigmoid
    h = jnp.dot(w5_ref[0], o4[:, :nb], preferred_element_type=jnp.float32)
    for l in range(1, lf):
        h = h + jnp.dot(w5_ref[l], o4[:, l * nb:(l + 1) * nb],
                        preferred_element_type=jnp.float32)
    h = leaky(h + b5_ref[...])                        # (16, nb)
    z = jnp.dot(w6_ref[...], h, preferred_element_type=jnp.float32) + b6_ref[...]
    o_ref[...] = pl.reciprocal(1.0 + jnp.exp(-z))     # sigmoid (exp on EUP), (1, nb)


# ------------------------------ host-side helpers -----------------------------------
def _num_tensorcores():
    """Best-effort query; only gates an optimization (2-way batch split on v7x)."""
    try:
        info = pltpu.get_tpu_info()
    except Exception:
        return 1
    for name in ("num_cores", "core_count", "cores_per_chip", "num_tensorcores"):
        v = getattr(info, name, None)
        if isinstance(v, int) and v >= 1:
            return v
    return 1


def _pick_batch_tile(n, l, num_cores):
    """Batch elements per grid step: multiple of 8, big enough to amortize the ~0.35us
    per-step overhead, small enough that the (lane-dense) working set fits every
    generation's scoped VMEM with double buffering."""
    per_elem_bytes = 6 * l * 4                        # input slab + pipelined intermediates
    budget = 8 << 20
    nb = min(max(n, 1), max(budget // per_elem_bytes, 8))
    if num_cores > 1 and n >= 16:
        nb = min(nb, -(-n // 2))                      # >=2 grid steps only on multi-TC parts
    nb = max(8, (nb // 8) * 8)
    return min(nb, 1024)


def _build_patches(x_ncl, nb, dtype):
    """(N,1,L) -> (G, 4, nb*L/4) lane-dense patch slabs (one static reshape+transpose).

    Sublane dim = conv2 patch offset k2; lane digits most->least significant are
    [e2|k3|e3|k4|e4|p4|n] so all downstream pooling / patch grouping / flatten become
    contiguous static lane slices.
    """
    n, _, l = x_ncl.shape
    lf = l // 512
    g = n // nb
    # L decomposes (most->least significant) as (p4, e4, k4, e3, k3, e2, k2)
    # with radices (Lf, 2, 4, 2, 4, 2, 4).
    x = x_ncl.reshape(g, nb, lf, 2, 4, 2, 4, 2, 4)    # (g, n, p4, e4, k4, e3, k3, e2, k2)
    x = jnp.transpose(x, (0, 8, 7, 6, 5, 4, 3, 2, 1)) # (g, k2, e2, k3, e3, k4, e4, p4, n)
    return x.reshape(g, 4, nb * l // 4).astype(dtype)


def _replicated_spec(arr):
    zeros = (0,) * arr.ndim
    return pl.BlockSpec(arr.shape, lambda gi, _z=zeros: _z)


def forward_pallas(x_ncl, kp, batch_tile=None, input_dtype=jnp.float32):
    """input_dtype=jnp.bfloat16 halves HBM traffic (accumulation stays f32); default f32
    to keep bit-faithful eval semantics."""
    n, c_in, l = x_ncl.shape
    assert c_in == 1 and l % 512 == 0 and l >= 512
    lf = l // 512
    nb = batch_tile or _pick_batch_tile(n, l, _num_tensorcores())
    n_pad = -(-n // nb) * nb
    if n_pad != n:
        x_ncl = jnp.concatenate(
            [x_ncl, jnp.zeros((n_pad - n, 1, l), x_ncl.dtype)], axis=0)
    g = n_pad // nb
    chunk = nb * l // 4

    p2 = _build_patches(x_ncl, nb, input_dtype)       # (g, 4, chunk), lane-dense
    weights = [kp["w2"], kp["b2"], kp["w3"], kp["b3"], kp["w4"], kp["b4"],
               kp["w5"], kp["b5"], kp["w6"], kp["b6"]]

    kernel = functools.partial(_fused_forward_kernel, nb=nb, lf=lf)
    out = pl.pallas_call(
        kernel,
        out_shape=jax.ShapeDtypeStruct((g, 1, nb), jnp.float32),
        grid=(g,),
        in_specs=[pl.BlockSpec((None, 4, chunk), lambda gi: (gi, 0, 0))]
                 + [_replicated_spec(w) for w in weights],
        out_specs=pl.BlockSpec((None, 1, nb), lambda gi: (gi, 0, 0)),
        compiler_params=pltpu.CompilerParams(
            dimension_semantics=("parallel",),
            vmem_limit_bytes=32 * 1024 * 1024),
    )(p2, *weights)
    return out.reshape(n_pad, 1)[:n]


# ---------------------------- parameter preparation ---------------------------------
def _fold_bn(gamma, beta, rmean, rvar, eps=1e-5):
    scale = gamma / jnp.sqrt(rvar + eps)
    shift = beta - rmean * scale
    return scale, shift


def prepare_kernel_params(p, lf):
    """Fold 1x1-conv+BN1 into conv2, BN2/3/4 into conv weights, BN5 into the final linear,
    and the Flatten permutation into the head weights. Pure host-side static math."""
    s1, t1 = _fold_bn(*p["bn1"])
    a = s1 * p["conv1_w"][:, 0, 0]                    # per-channel gain of conv1+BN1
    d = s1 * p["conv1_b"] + t1                        # per-channel offset of conv1+BN1

    s2, t2 = _fold_bn(*p["bn2"])
    w2 = p["conv2_w"]                                 # (co, ci, k)
    w2k = jnp.einsum("oik,i->ok", w2, a) * s2[:, None]                  # (6, 4)
    b2k = (s2 * (p["conv2_b"] + jnp.einsum("oik,i->o", w2, d)) + t2).reshape(6, 1)

    def fold_conv(w, b, bn):
        s, t = _fold_bn(*bn)
        wk = jnp.transpose(w, (2, 0, 1)) * s[None, :, None]             # (k, co, ci)
        bk = (s * b + t).reshape(6, 1)
        return wk, bk

    w3k, b3k = fold_conv(p["conv3_w"], p["conv3_b"], p["bn3"])
    w4k, b4k = fold_conv(p["conv4_w"], p["conv4_b"], p["bn4"])

    # Linear(6*Lf,16): torch Flatten is channel-major (feature = c*Lf + p); kernel
    # consumes one (16,6) slice per position p.
    w5k = jnp.transpose(p["lin5_w"].reshape(16, 6, lf), (2, 0, 1))      # (Lf, 16, 6)
    b5k = p["lin5_b"].reshape(16, 1)

    # BN5 folded into the final Linear.
    s5, t5 = _fold_bn(*p["bn5"])
    w6k = p["lin6_w"] * s5[None, :]                                     # (1, 16)
    b6k = (p["lin6_b"] + p["lin6_w"] @ t5).reshape(1, 1)
    return dict(w2=w2k, b2=b2k, w3=w3k, b3=b3k, w4=w4k, b4=b4k,
                w5=w5k, b5=b5k, w6=w6k, b6=b6k)


def init_torch_params(key, lf):
    """Random parameters in PyTorch layout (used by both reference and kernel paths)."""
    ks = jax.random.split(key, 20)

    def uni(k, shape, bound):
        return jax.random.uniform(k, shape, jnp.float32, -bound, bound)

    def bn(k, c):
        k1, k2, k3, k4 = jax.random.split(k, 4)
        gamma = 1.0 + 0.1 * jax.random.normal(k1, (c,), jnp.float32)
        beta = 0.1 * jax.random.normal(k2, (c,), jnp.float32)
        rmean = 0.1 * jax.random.normal(k3, (c,), jnp.float32)
        rvar = jax.random.uniform(k4, (c,), jnp.float32, 0.5, 1.5)
        return (gamma, beta, rmean, rvar)

    p = {}
    p["conv1_w"] = uni(ks[0], (6, 1, 1), 1.0)
    p["conv1_b"] = uni(ks[1], (6,), 1.0)
    p["bn1"] = bn(ks[2], 6)
    bnd = 1.0 / (6 * 4) ** 0.5
    for i, base in zip((2, 3, 4), (3, 6, 9)):
        p[f"conv{i}_w"] = uni(ks[base], (6, 6, 4), bnd)
        p[f"conv{i}_b"] = uni(ks[base + 1], (6,), bnd)
        p[f"bn{i}"] = bn(ks[base + 2], 6)
    lin_in = 6 * lf
    b5 = 1.0 / lin_in ** 0.5
    p["lin5_w"] = uni(ks[12], (16, lin_in), b5)
    p["lin5_b"] = uni(ks[13], (16,), b5)
    p["bn5"] = bn(ks[14], 16)
    b6 = 1.0 / 16 ** 0.5
    p["lin6_w"] = uni(ks[15], (1, 16), b6)
    p["lin6_b"] = uni(ks[16], (1,), b6)
    return p


# ------------------------ pure-JAX reference (PyTorch semantics) --------------------
def reference_forward(x_ncl, p, eps=1e-5):
    def bn(h, stats):
        gamma, beta, rmean, rvar = stats
        s = gamma / jnp.sqrt(rvar + eps)
        t = beta - rmean * s
        if h.ndim == 3:
            return h * s[None, :, None] + t[None, :, None]
        return h * s[None, :] + t[None, :]

    def conv1d(h, w, b):                              # stride == kernel (non-overlapping)
        co, ci, k = w.shape
        n, c, li = h.shape
        patches = h.reshape(n, c, li // k, k)
        return jnp.einsum("ncpk,ock->nop", patches, w) + b[None, :, None]

    def leaky(h):
        return jnp.where(h >= 0.0, h, NEG_SLOPE * h)

    def maxpool2(h):
        n, c, li = h.shape
        return h.reshape(n, c, li // 2, 2).max(axis=-1)

    h = bn(conv1d(x_ncl, p["conv1_w"], p["conv1_b"]), p["bn1"])
    for i in (2, 3, 4):
        h = maxpool2(leaky(bn(conv1d(h, p[f"conv{i}_w"], p[f"conv{i}_b"]), p[f"bn{i}"])))
    feat = h.reshape(h.shape[0], -1)                  # nn.Flatten(start_dim=1) on (N, C, Lf)
    h = leaky(feat @ p["lin5_w"].T + p["lin5_b"])
    h = bn(h, p["bn5"])
    z = h @ p["lin6_w"].T + p["lin6_b"]
    return jax.nn.sigmoid(z)


# --------------------------------------- main ---------------------------------------
if __name__ == "__main__":
    key = jax.random.PRNGKey(0)
    kparam, kx = jax.random.split(key)
    N, L = 2, 1024                                    # LinearInputLength = 6 * (L // 512) = 12
    lf = L // 512

    torch_params = init_torch_params(kparam, lf)
    kernel_params = prepare_kernel_params(torch_params, lf)
    x = jax.random.normal(kx, (N, 1, L), jnp.float32)

    fwd = jax.jit(lambda a: forward_pallas(a, kernel_params))
    y = jax.block_until_ready(fwd(x))
    y_ref = reference_forward(x, torch_params)

    assert y.shape == (N, 1), y.shape
    err = float(jnp.max(jnp.abs(y - y_ref)))
    assert err < 1e-3, f"mismatch vs. pure-JAX reference: {err}"
    print("KERNEL_OK")
</pallas_src>

<mosaic_0001>
module attributes {stable_mosaic.version = 11 : i64} {
  func.func @_fused_forward_kernel(%arg0: i32, %arg1: memref<1x4x2048xf32, #tpu.memory_space<vmem>>, %arg2: memref<6x4xf32, #tpu.memory_space<vmem>>, %arg3: memref<6x1xf32, #tpu.memory_space<vmem>>, %arg4: memref<4x6x6xf32, #tpu.memory_space<vmem>>, %arg5: memref<6x1xf32, #tpu.memory_space<vmem>>, %arg6: memref<4x6x6xf32, #tpu.memory_space<vmem>>, %arg7: memref<6x1xf32, #tpu.memory_space<vmem>>, %arg8: memref<2x16x6xf32, #tpu.memory_space<vmem>>, %arg9: memref<16x1xf32, #tpu.memory_space<vmem>>, %arg10: memref<1x16xf32, #tpu.memory_space<vmem>>, %arg11: memref<1x1xf32, #tpu.memory_space<vmem>>, %arg12: memref<1x1x8xf32, #tpu.memory_space<vmem>>) attributes {dimension_semantics = [#tpu.dimension_semantics<parallel>], iteration_bounds = array<i64: 1>, scalar_prefetch = 0 : i64, scratch_operands = 0 : i64, tpu.core_type = #tpu.core_type<tc>, window_params = [{transform_indices = @transform_0, window_bounds = array<i64: 1, 4, 2048>}, {pipeline_mode = #tpu.pipeline_mode<synchronous>, transform_indices = @transform_1, window_bounds = array<i64: 6, 4>}, {pipeline_mode = #tpu.pipeline_mode<synchronous>, transform_indices = @transform_2, window_bounds = array<i64: 6, 1>}, {pipeline_mode = #tpu.pipeline_mode<synchronous>, transform_indices = @transform_3, window_bounds = array<i64: 4, 6, 6>}, {pipeline_mode = #tpu.pipeline_mode<synchronous>, transform_indices = @transform_4, window_bounds = array<i64: 6, 1>}, {pipeline_mode = #tpu.pipeline_mode<synchronous>, transform_indices = @transform_5, window_bounds = array<i64: 4, 6, 6>}, {pipeline_mode = #tpu.pipeline_mode<synchronous>, transform_indices = @transform_6, window_bounds = array<i64: 6, 1>}, {pipeline_mode = #tpu.pipeline_mode<synchronous>, transform_indices = @transform_7, window_bounds = array<i64: 2, 16, 6>}, {pipeline_mode = #tpu.pipeline_mode<synchronous>, transform_indices = @transform_8, window_bounds = array<i64: 16, 1>}, {pipeline_mode = #tpu.pipeline_mode<synchronous>, transform_indices = @transform_9, window_bounds = array<i64: 1, 16>}, {pipeline_mode = #tpu.pipeline_mode<synchronous>, transform_indices = @transform_10, window_bounds = array<i64: 1, 1>}, {transform_indices = @transform_11, window_bounds = array<i64: 1, 1, 8>}]} {
    %c0 = arith.constant 0 : index
    %c0_0 = arith.constant 0 : index
    %c0_1 = arith.constant 0 : index
    %0 = vector.load %arg1[%c0, %c0_0, %c0_1] : memref<1x4x2048xf32, #tpu.memory_space<vmem>>, vector<1x4x2048xf32>
    %1 = vector.shape_cast %0 : vector<1x4x2048xf32> to vector<4x2048xf32>
    %c0_2 = arith.constant 0 : index
    %c0_3 = arith.constant 0 : index
    %2 = vector.load %arg2[%c0_2, %c0_3] : memref<6x4xf32, #tpu.memory_space<vmem>>, vector<6x4xf32>
    %cst = arith.constant dense<0.000000e+00> : vector<6x2048xf32>
    %3 = tpu.matmul %2, %1, %cst {dimension_numbers = #tpu.dot_dimension_numbers<[1], [0], [0], [1], [0, 0, 1, 1], [], []>} : vector<6x4xf32>, vector<4x2048xf32>, vector<6x2048xf32> -> vector<6x2048xf32>
    %c0_4 = arith.constant 0 : index
    %c0_5 = arith.constant 0 : index
    %4 = vector.load %arg3[%c0_4, %c0_5] : memref<6x1xf32, #tpu.memory_space<vmem>>, vector<6x1xf32>
    %5 = vector.broadcast %4 : vector<6x1xf32> to vector<6x2048xf32>
    %6 = arith.addf %3, %5 : vector<6x2048xf32>
    %cst_6 = arith.constant 0.000000e+00 : f32
    %7 = vector.broadcast %cst_6 : f32 to vector<6x2048xf32>
    %8 = arith.cmpf oge, %6, %7 : vector<6x2048xf32>
    %cst_7 = arith.constant 0.00999999977 : f32
    %9 = vector.broadcast %cst_7 : f32 to vector<6x2048xf32>
    %10 = arith.mulf %9, %6 : vector<6x2048xf32>
    %11 = arith.select %8, %6, %10 : vector<6x2048xi1>, vector<6x2048xf32>
    %12 = vector.extract_strided_slice %11 {offsets = [0, 0], sizes = [6, 1024], strides = [1, 1]} : vector<6x2048xf32> to vector<6x1024xf32>
    %13 = vector.extract_strided_slice %11 {offsets = [0, 1024], sizes = [6, 1024], strides = [1, 1]} : vector<6x2048xf32> to vector<6x1024xf32>
    %14 = arith.maximumf %12, %13 : vector<6x1024xf32>
    %c0_8 = arith.constant 0 : index
    %c0_9 = arith.constant 0 : index
    %c0_10 = arith.constant 0 : index
    %15 = vector.load %arg4[%c0_8, %c0_9, %c0_10] : memref<4x6x6xf32, #tpu.memory_space<vmem>>, vector<1x6x6xf32>
    %16 = vector.shape_cast %15 : vector<1x6x6xf32> to vector<6x6xf32>
    %17 = vector.extract_strided_slice %14 {offsets = [0, 0], sizes = [6, 256], strides = [1, 1]} : vector<6x1024xf32> to vector<6x256xf32>
    %cst_11 = arith.constant dense<0.000000e+00> : vector<6x256xf32>
    %18 = tpu.matmul %16, %17, %cst_11 {dimension_numbers = #tpu.dot_dimension_numbers<[1], [0], [0], [1], [0, 0, 1, 1], [], []>} : vector<6x6xf32>, vector<6x256xf32>, vector<6x256xf32> -> vector<6x256xf32>
    %c1 = arith.constant 1 : index
    %c0_12 = arith.constant 0 : index
    %c0_13 = arith.constant 0 : index
    %19 = vector.load %arg4[%c1, %c0_12, %c0_13] : memref<4x6x6xf32, #tpu.memory_space<vmem>>, vector<1x6x6xf32>
    %20 = vector.shape_cast %19 : vector<1x6x6xf32> to vector<6x6xf32>
    %21 = vector.extract_strided_slice %14 {offsets = [0, 256], sizes = [6, 256], strides = [1, 1]} : vector<6x1024xf32> to vector<6x256xf32>
    %cst_14 = arith.constant dense<0.000000e+00> : vector<6x256xf32>
    %22 = tpu.matmul %20, %21, %cst_14 {dimension_numbers = #tpu.dot_dimension_numbers<[1], [0], [0], [1], [0, 0, 1, 1], [], []>} : vector<6x6xf32>, vector<6x256xf32>, vector<6x256xf32> -> vector<6x256xf32>
    %23 = arith.addf %18, %22 : vector<6x256xf32>
    %c2 = arith.constant 2 : index
    %c0_15 = arith.constant 0 : index
    %c0_16 = arith.constant 0 : index
    %24 = vector.load %arg4[%c2, %c0_15, %c0_16] : memref<4x6x6xf32, #tpu.memory_space<vmem>>, vector<1x6x6xf32>
    %25 = vector.shape_cast %24 : vector<1x6x6xf32> to vector<6x6xf32>
    %26 = vector.extract_strided_slice %14 {offsets = [0, 512], sizes = [6, 256], strides = [1, 1]} : vector<6x1024xf32> to vector<6x256xf32>
    %cst_17 = arith.constant dense<0.000000e+00> : vector<6x256xf32>
    %27 = tpu.matmul %25, %26, %cst_17 {dimension_numbers = #tpu.dot_dimension_numbers<[1], [0], [0], [1], [0, 0, 1, 1], [], []>} : vector<6x6xf32>, vector<6x256xf32>, vector<6x256xf32> -> vector<6x256xf32>
    %28 = arith.addf %23, %27 : vector<6x256xf32>
    %c3 = arith.constant 3 : index
    %c0_18 = arith.constant 0 : index
    %c0_19 = arith.constant 0 : index
    %29 = vector.load %arg4[%c3, %c0_18, %c0_19] : memref<4x6x6xf32, #tpu.memory_space<vmem>>, vector<1x6x6xf32>
    %30 = vector.shape_cast %29 : vector<1x6x6xf32> to vector<6x6xf32>
    %31 = vector.extract_strided_slice %14 {offsets = [0, 768], sizes = [6, 256], strides = [1, 1]} : vector<6x1024xf32> to vector<6x256xf32>
    %cst_20 = arith.constant dense<0.000000e+00> : vector<6x256xf32>
    %32 = tpu.matmul %30, %31, %cst_20 {dimension_numbers = #tpu.dot_dimension_numbers<[1], [0], [0], [1], [0, 0, 1, 1], [], []>} : vector<6x6xf32>, vector<6x256xf32>, vector<6x256xf32> -> vector<6x256xf32>
    %33 = arith.addf %28, %32 : vector<6x256xf32>
    %c0_21 = arith.constant 0 : index
    %c0_22 = arith.constant 0 : index
    %34 = vector.load %arg5[%c0_21, %c0_22] : memref<6x1xf32, #tpu.memory_space<vmem>>, vector<6x1xf32>
    %35 = vector.broadcast %34 : vector<6x1xf32> to vector<6x256xf32>
    %36 = arith.addf %33, %35 : vector<6x256xf32>
    %cst_23 = arith.constant 0.000000e+00 : f32
    %37 = vector.broadcast %cst_23 : f32 to vector<6x256xf32>
    %38 = arith.cmpf oge, %36, %37 : vector<6x256xf32>
    %cst_24 = arith.constant 0.00999999977 : f32
    %39 = vector.broadcast %cst_24 : f32 to vector<6x256xf32>
    %40 = arith.mulf %39, %36 : vector<6x256xf32>
    %41 = arith.select %38, %36, %40 : vector<6x256xi1>, vector<6x256xf32>
    %42 = vector.extract_strided_slice %41 {offsets = [0, 0], sizes = [6, 128], strides = [1, 1]} : vector<6x256xf32> to vector<6x128xf32>
    %43 = vector.extract_strided_slice %41 {offsets = [0, 128], sizes = [6, 128], strides = [1, 1]} : vector<6x256xf32> to vector<6x128xf32>
    %44 = arith.maximumf %42, %43 : vector<6x128xf32>
    %c0_25 = arith.constant 0 : index
    %c0_26 = arith.constant 0 : index
    %c0_27 = arith.constant 0 : index
    %45 = vector.load %arg6[%c0_25, %c0_26, %c0_27] : memref<4x6x6xf32, #tpu.memory_space<vmem>>, vector<1x6x6xf32>
    %46 = vector.shape_cast %45 : vector<1x6x6xf32> to vector<6x6xf32>
    %47 = vector.extract_strided_slice %44 {offsets = [0, 0], sizes = [6, 32], strides = [1, 1]} : vector<6x128xf32> to vector<6x32xf32>
    %cst_28 = arith.constant dense<0.000000e+00> : vector<6x32xf32>
    %48 = tpu.matmul %46, %47, %cst_28 {dimension_numbers = #tpu.dot_dimension_numbers<[1], [0], [0], [1], [0, 0, 1, 1], [], []>} : vector<6x6xf32>, vector<6x32xf32>, vector<6x32xf32> -> vector<6x32xf32>
    %c1_29 = arith.constant 1 : index
    %c0_30 = arith.constant 0 : index
    %c0_31 = arith.constant 0 : index
    %49 = vector.load %arg6[%c1_29, %c0_30, %c0_31] : memref<4x6x6xf32, #tpu.memory_space<vmem>>, vector<1x6x6xf32>
    %50 = vector.shape_cast %49 : vector<1x6x6xf32> to vector<6x6xf32>
    %51 = vector.extract_strided_slice %44 {offsets = [0, 32], sizes = [6, 32], strides = [1, 1]} : vector<6x128xf32> to vector<6x32xf32>
    %cst_32 = arith.constant dense<0.000000e+00> : vector<6x32xf32>
    %52 = tpu.matmul %50, %51, %cst_32 {dimension_numbers = #tpu.dot_dimension_numbers<[1], [0], [0], [1], [0, 0, 1, 1], [], []>} : vector<6x6xf32>, vector<6x32xf32>, vector<6x32xf32> -> vector<6x32xf32>
    %53 = arith.addf %48, %52 : vector<6x32xf32>
    %c2_33 = arith.constant 2 : index
    %c0_34 = arith.constant 0 : index
    %c0_35 = arith.constant 0 : index
    %54 = vector.load %arg6[%c2_33, %c0_34, %c0_35] : memref<4x6x6xf32, #tpu.memory_space<vmem>>, vector<1x6x6xf32>
    %55 = vector.shape_cast %54 : vector<1x6x6xf32> to vector<6x6xf32>
    %56 = vector.extract_strided_slice %44 {offsets = [0, 64], sizes = [6, 32], strides = [1, 1]} : vector<6x128xf32> to vector<6x32xf32>
    %cst_36 = arith.constant dense<0.000000e+00> : vector<6x32xf32>
    %57 = tpu.matmul %55, %56, %cst_36 {dimension_numbers = #tpu.dot_dimension_numbers<[1], [0], [0], [1], [0, 0, 1, 1], [], []>} : vector<6x6xf32>, vector<6x32xf32>, vector<6x32xf32> -> vector<6x32xf32>
    %58 = arith.addf %53, %57 : vector<6x32xf32>
    %c3_37 = arith.constant 3 : index
    %c0_38 = arith.constant 0 : index
    %c0_39 = arith.constant 0 : index
    %59 = vector.load %arg6[%c3_37, %c0_38, %c0_39] : memref<4x6x6xf32, #tpu.memory_space<vmem>>, vector<1x6x6xf32>
    %60 = vector.shape_cast %59 : vector<1x6x6xf32> to vector<6x6xf32>
    %61 = vector.extract_strided_slice %44 {offsets = [0, 96], sizes = [6, 32], strides = [1, 1]} : vector<6x128xf32> to vector<6x32xf32>
    %cst_40 = arith.constant dense<0.000000e+00> : vector<6x32xf32>
    %62 = tpu.matmul %60, %61, %cst_40 {dimension_numbers = #tpu.dot_dimension_numbers<[1], [0], [0], [1], [0, 0, 1, 1], [], []>} : vector<6x6xf32>, vector<6x32xf32>, vector<6x32xf32> -> vector<6x32xf32>
    %63 = arith.addf %58, %62 : vector<6x32xf32>
    %c0_41 = arith.constant 0 : index
    %c0_42 = arith.constant 0 : index
    %64 = vector.load %arg7[%c0_41, %c0_42] : memref<6x1xf32, #tpu.memory_space<vmem>>, vector<6x1xf32>
    %65 = vector.broadcast %64 : vector<6x1xf32> to vector<6x32xf32>
    %66 = arith.addf %63, %65 : vector<6x32xf32>
    %cst_43 = arith.constant 0.000000e+00 : f32
    %67 = vector.broadcast %cst_43 : f32 to vector<6x32xf32>
    %68 = arith.cmpf oge, %66, %67 : vector<6x32xf32>
    %cst_44 = arith.constant 0.00999999977 : f32
    %69 = vector.broadcast %cst_44 : f32 to vector<6x32xf32>
    %70 = arith.mulf %69, %66 : vector<6x32xf32>
    %71 = arith.select %68, %66, %70 : vector<6x32xi1>, vector<6x32xf32>
    %72 = vector.extract_strided_slice %71 {offsets = [0, 0], sizes = [6, 16], strides = [1, 1]} : vector<6x32xf32> to vector<6x16xf32>
    %73 = vector.extract_strided_slice %71 {offsets = [0, 16], sizes = [6, 16], strides = [1, 1]} : vector<6x32xf32> to vector<6x16xf32>
    %74 = arith.maximumf %72, %73 : vector<6x16xf32>
    %c0_45 = arith.constant 0 : index
    %c0_46 = arith.constant 0 : index
    %c0_47 = arith.constant 0 : index
    %75 = vector.load %arg8[%c0_45, %c0_46, %c0_47] : memref<2x16x6xf32, #tpu.memory_space<vmem>>, vector<1x16x6xf32>
    %76 = vector.shape_cast %75 : vector<1x16x6xf32> to vector<16x6xf32>
    %77 = vector.extract_strided_slice %74 {offsets = [0, 0], sizes = [6, 8], strides = [1, 1]} : vector<6x16xf32> to vector<6x8xf32>
    %cst_48 = arith.constant dense<0.000000e+00> : vector<16x8xf32>
    %78 = tpu.matmul %76, %77, %cst_48 {dimension_numbers = #tpu.dot_dimension_numbers<[1], [0], [0], [1], [0, 0, 1, 1], [], []>} : vector<16x6xf32>, vector<6x8xf32>, vector<16x8xf32> -> vector<16x8xf32>
    %c1_49 = arith.constant 1 : index
    %c0_50 = arith.constant 0 : index
    %c0_51 = arith.constant 0 : index
    %79 = vector.load %arg8[%c1_49, %c0_50, %c0_51] : memref<2x16x6xf32, #tpu.memory_space<vmem>>, vector<1x16x6xf32>
    %80 = vector.shape_cast %79 : vector<1x16x6xf32> to vector<16x6xf32>
    %81 = vector.extract_strided_slice %74 {offsets = [0, 8], sizes = [6, 8], strides = [1, 1]} : vector<6x16xf32> to vector<6x8xf32>
    %cst_52 = arith.constant dense<0.000000e+00> : vector<16x8xf32>
    %82 = tpu.matmul %80, %81, %cst_52 {dimension_numbers = #tpu.dot_dimension_numbers<[1], [0], [0], [1], [0, 0, 1, 1], [], []>} : vector<16x6xf32>, vector<6x8xf32>, vector<16x8xf32> -> vector<16x8xf32>
    %83 = arith.addf %78, %82 : vector<16x8xf32>
    %c0_53 = arith.constant 0 : index
    %c0_54 = arith.constant 0 : index
    %84 = vector.load %arg9[%c0_53, %c0_54] : memref<16x1xf32, #tpu.memory_space<vmem>>, vector<16x1xf32>
    %85 = vector.broadcast %84 : vector<16x1xf32> to vector<16x8xf32>
    %86 = arith.addf %83, %85 : vector<16x8xf32>
    %cst_55 = arith.constant 0.000000e+00 : f32
    %87 = vector.broadcast %cst_55 : f32 to vector<16x8xf32>
    %88 = arith.cmpf oge, %86, %87 : vector<16x8xf32>
    %cst_56 = arith.constant 0.00999999977 : f32
    %89 = vector.broadcast %cst_56 : f32 to vector<16x8xf32>
    %90 = arith.mulf %89, %86 : vector<16x8xf32>
    %91 = arith.select %88, %86, %90 : vector<16x8xi1>, vector<16x8xf32>
    %c0_57 = arith.constant 0 : index
    %c0_58 = arith.constant 0 : index
    %92 = vector.load %arg10[%c0_57, %c0_58] : memref<1x16xf32, #tpu.memory_space<vmem>>, vector<1x16xf32>
    %cst_59 = arith.constant dense<0.000000e+00> : vector<1x8xf32>
    %93 = tpu.matmul %92, %91, %cst_59 {dimension_numbers = #tpu.dot_dimension_numbers<[1], [0], [0], [1], [0, 0, 1, 1], [], []>} : vector<1x16xf32>, vector<16x8xf32>, vector<1x8xf32> -> vector<1x8xf32>
    %c0_60 = arith.constant 0 : index
    %c0_61 = arith.constant 0 : index
    %94 = vector.load %arg11[%c0_60, %c0_61] : memref<1x1xf32, #tpu.memory_space<vmem>>, vector<1x1xf32>
    %95 = vector.broadcast %94 : vector<1x1xf32> to vector<1x8xf32>
    %96 = arith.addf %93, %95 : vector<1x8xf32>
    %cst_62 = arith.constant 0.000000e+00 : f32
    %97 = vector.broadcast %cst_62 : f32 to vector<1x8xf32>
    %98 = arith.subf %97, %96 : vector<1x8xf32>
    %99 = math.exp %98 : vector<1x8xf32>
    %cst_63 = arith.constant 1.000000e+00 : f32
    %100 = vector.broadcast %cst_63 : f32 to vector<1x8xf32>
    %101 = arith.addf %100, %99 : vector<1x8xf32>
    %102 = tpu.reciprocal %101 : vector<1x8xf32> -> vector<1x8xf32>
    %c0_64 = arith.constant 0 : index
    %c0_65 = arith.constant 0 : index
    %c0_66 = arith.constant 0 : index
    %103 = vector.load %arg12[%c0_64, %c0_65, %c0_66] : memref<1x1x8xf32, #tpu.memory_space<vmem>>, vector<1x1x8xf32>
    %104 = vector.shape_cast %103 : vector<1x1x8xf32> to vector<1x8xf32>
    %105 = vector.shape_cast %102 : vector<1x8xf32> to vector<1x1x8xf32>
    tpu.vector_store %arg12[%c0_64, %c0_65, %c0_66], %105 {strides = array<i32>} : memref<1x1x8xf32, #tpu.memory_space<vmem>>, vector<1x1x8xf32>,
    return
  }
  func.func @transform_0(%arg0: i32) -> (i32, i32, i32) {
    %c0_i32 = arith.constant 0 : i32
    %c0_i32_0 = arith.constant 0 : i32
    %c0_i32_1 = arith.constant 0 : i32
    return %arg0, %c0_i32, %c0_i32_0 : i32, i32, i32
  }
  func.func @transform_1(%arg0: i32) -> (i32, i32) {
    %c0_i32 = arith.constant 0 : i32
    %c0_i32_0 = arith.constant 0 : i32
    %c0_i32_1 = arith.constant 0 : i32
    return %c0_i32, %c0_i32_0 : i32, i32
  }
  func.func @transform_2(%arg0: i32) -> (i32, i32) {
    %c0_i32 = arith.constant 0 : i32
    %c0_i32_0 = arith.constant 0 : i32
    %c0_i32_1 = arith.constant 0 : i32
    return %c0_i32, %c0_i32_0 : i32, i32
  }
  func.func @transform_3(%arg0: i32) -> (i32, i32, i32) {
    %c0_i32 = arith.constant 0 : i32
    %c0_i32_0 = arith.constant 0 : i32
    %c0_i32_1 = arith.constant 0 : i32
    %c0_i32_2 = arith.constant 0 : i32
    return %c0_i32, %c0_i32_0, %c0_i32_1 : i32, i32, i32
  }
  func.func @transform_4(%arg0: i32) -> (i32, i32) {
    %c0_i32 = arith.constant 0 : i32
    %c0_i32_0 = arith.constant 0 : i32
    %c0_i32_1 = arith.constant 0 : i32
    return %c0_i32, %c0_i32_0 : i32, i32
  }
  func.func @transform_5(%arg0: i32) -> (i32, i32, i32) {
    %c0_i32 = arith.constant 0 : i32
    %c0_i32_0 = arith.constant 0 : i32
    %c0_i32_1 = arith.constant 0 : i32
    %c0_i32_2 = arith.constant 0 : i32
    return %c0_i32, %c0_i32_0, %c0_i32_1 : i32, i32, i32
  }
  func.func @transform_6(%arg0: i32) -> (i32, i32) {
    %c0_i32 = arith.constant 0 : i32
    %c0_i32_0 = arith.constant 0 : i32
    %c0_i32_1 = arith.constant 0 : i32
    return %c0_i32, %c0_i32_0 : i32, i32
  }
  func.func @transform_7(%arg0: i32) -> (i32, i32, i32) {
    %c0_i32 = arith.constant 0 : i32
    %c0_i32_0 = arith.constant 0 : i32
    %c0_i32_1 = arith.constant 0 : i32
    %c0_i32_2 = arith.constant 0 : i32
    return %c0_i32, %c0_i32_0, %c0_i32_1 : i32, i32, i32
  }
  func.func @transform_8(%arg0: i32) -> (i32, i32) {
    %c0_i32 = arith.constant 0 : i32
    %c0_i32_0 = arith.constant 0 : i32
    %c0_i32_1 = arith.constant 0 : i32
    return %c0_i32, %c0_i32_0 : i32, i32
  }
  func.func @transform_9(%arg0: i32) -> (i32, i32) {
    %c0_i32 = arith.constant 0 : i32
    %c0_i32_0 = arith.constant 0 : i32
    %c0_i32_1 = arith.constant 0 : i32
    return %c0_i32, %c0_i32_0 : i32, i32
  }
  func.func @transform_10(%arg0: i32) -> (i32, i32) {
    %c0_i32 = arith.constant 0 : i32
    %c0_i32_0 = arith.constant 0 : i32
    %c0_i32_1 = arith.constant 0 : i32
    return %c0_i32, %c0_i32_0 : i32, i32
  }
  func.func @transform_11(%arg0: i32) -> (i32, i32, i32) {
    %c0_i32 = arith.constant 0 : i32
    %c0_i32_0 = arith.constant 0 : i32
    %c0_i32_1 = arith.constant 0 : i32
    return %arg0, %c0_i32, %c0_i32_0 : i32, i32, i32
  }
}

</mosaic_0001>

<bundles_post_ra>
// kernel: _lambda_.1
= control target key start
LH: loop header
LB: loop body
LE: loop exit
PB: predicated region body
PF: predicated region fallthrough
CT: control target
= control target key end

     0   :  { %vm75_vm0 = vcmask 1043456   ;;  %v1848_v2 = vmov 0.0   ;;  %v1849_v7 = vmov 0   ;;  %vm71_vm1 = vcmask 31744   ;;  %s1851_s24 = smov 32   ;;  %s1853_s25 = smov 64   ;;  %s2117_s0 = inlined_call_operand.vmem [shape: f32[1,4,2048], index: 0, kind: input, shape index: {}]   ;;  %s2118_s1 = inlined_call_operand.vmem [shape: f32[6,4], index: 1, kind: input, shape index: {}]   ;;  %s2119_s2 = inlined_call_operand.vmem [shape: f32[6,1], index: 2, kind: input, shape index: {}]   ;;  %s2120_s4 = inlined_call_operand.vmem [shape: f32[6,1], index: 4, kind: input, shape index: {}]   ;;  %s2121_s3 = inlined_call_operand.vmem [shape: f32[4,6,6], index: 3, kind: input, shape index: {}]   ;;  %s2122_s6 = inlined_call_operand.vmem [shape: f32[6,1], index: 6, kind: input, shape index: {}]   ;;  %s2123_s5 = inlined_call_operand.vmem [shape: f32[4,6,6], index: 5, kind: input, shape index: {}]   ;;  %s2124_s10 = inlined_call_operand.<no memory space> [shape: f32[1,1], index: 10, kind: input, shape index: {}]   ;;  %s2125_s8 = inlined_call_operand.vmem [shape: f32[16,1], index: 8, kind: input, shape index: {}]   ;;  %s2126_s7 = inlined_call_operand.vmem [shape: f32[2,16,6], index: 7, kind: input, shape index: {}]   ;;  %s2127_s9 = inlined_call_operand.vmem [shape: f32[1,16], index: 9, kind: input, shape index: {}]   ;;  %s2128_s11 = inlined_call_operand.vmem [shape: f32[1,1,8], index: 11, kind: output, shape index: {}]  }
   0x1   :  { %v40_v0 = vld [vmem:[%s2117_s0] sm:$0xff]  ;;  %v41_v1 = vld [vmem:[%s2117_s0 + $0x8] sm:$0xff]  ;;  %172 = vmatprep.mubr.f32.mxu0 %v1848_v2  ;;  %243 = vmatprep.mubr.f32.mxu1 %v1848_v2  ;;  %v42_v5 = vld [vmem:[%s2117_s0 + $0x10] sm:$0xff]  ;;  %vm739_vm6 = vcmask 1045504   ;;  %vm735_vm8 = vcmask 48128  }
   0x2   :  { %v63_v3 = vcombine.high %v40_v0, %v40_v0  ;;  %v64_v4 = vcombine.high %v41_v1, %v41_v1  ;;  %v43_v6 = vld [vmem:[%s2117_s0 + $0x18] sm:$0xff]  ;;  %1834 = vset.pattern.permute.xlu0 %v1849_v7  ;;  %1835 = vset.pattern.permute.xlu1 %v1849_v7  ;;  %v48_v8 = vld [vmem:[%s2118_s1] sm:$0x3f]  ;;  %v65_v9 = vcombine.high %v42_v5, %v42_v5  ;;  %v45_v12 = vld [vmem:[%s2117_s0 + $0x28] sm:$0xff] }
   0x3   :  { %v66_v10 = vcombine.high %v43_v6, %v43_v6  ;;  %v44_v11 = vld [vmem:[%s2117_s0 + $0x20] sm:$0xff]  ;;  %v68_v14 = vcombine.high %v45_v12, %v45_v12  ;;  %v46_v15 = vld [vmem:[%s2117_s0 + $0x30] sm:$0xff]  ;;  %v47_v16 = vld [vmem:[%s2117_s0 + $0x38] sm:$0xff] }
   0x4   :  { %1701 = vmatprep.subr.msk.mxu0 %vm75_vm0, %v63_v3  ;;  %1704 = vmatprep.subr.msk.mxu1 %vm75_vm0, %v64_v4  ;;  %v67_v13 = vcombine.high %v44_v11, %v44_v11  ;;  %v69_v17 = vcombine.high %v46_v15, %v46_v15  ;;  %v70_v18 = vcombine.high %v47_v16, %v47_v16  ;;  %v49_v19 = vld [vmem:[%s2119_s2] sm:$0x3f] }
   0x5   :  { %1702 = vmatpush1.msk.msra.mxu0 %vm75_vm0, %v40_v0  ;;  %1705 = vmatpush1.msk.msra.mxu1 %vm75_vm0, %v41_v1  ;;  %v1065_v20 = vld [vmem:[%s2120_s4] sm:$0x3f]  ;;  %s1855_s4 = smov 120  }
   0x6   :  { %1703 = vmatmul.mubr.msk.f32.vlgmr.msra.gmra.mrb[0].mxu0 %vm71_vm1, %v48_v8  ;;  %1706 = vmatmul.mubr.msk.f32.vlgmr.msra.gmra.mrb[0].mxu1 %vm71_vm1, %v48_v8 }
   0x7   :  { %1707 = vmatprep.subr.msk.mxu0 %vm75_vm0, %v65_v9  ;;  %1710 = vmatprep.subr.msk.mxu1 %vm75_vm0, %v66_v10 }
   0x8   :  { %1708 = vmatpush1.msk.msra.mxu0 %vm75_vm0, %v42_v5  ;;  %314 = vmatprep.mubr.f32.mxu0 %v1848_v2 }
   0x9   :  { %1711 = vmatpush1.msk.msra.mxu1 %vm75_vm0, %v43_v6  ;;  %385 = vmatprep.mubr.f32.mxu1 %v1848_v2 }
   0xa   :  { %1709 = vmatmul.mubr.msk.f32.vlgmr.msra.gmra.mrb[2].mxu0 %vm71_vm1, %v48_v8  ;;  %1712 = vmatmul.mubr.msk.f32.vlgmr.msra.gmra.mrb[2].mxu1 %vm71_vm1, %v48_v8 }
   0xb   :  { %1713 = vmatprep.subr.msk.mxu0 %vm75_vm0, %v67_v13  ;;  %1716 = vmatprep.subr.msk.mxu1 %vm75_vm0, %v68_v14 }
   0xc   :  { %1714 = vmatpush1.msk.msra.mxu0 %vm75_vm0, %v44_v11  ;;  %456 = vmatprep.mubr.f32.mxu0 %v1848_v2 }
   0xd   :  { %1717 = vmatpush1.msk.msra.mxu1 %vm75_vm0, %v45_v12  ;;  %527 = vmatprep.mubr.f32.mxu1 %v1848_v2 }
   0xe   :  { %1715 = vmatmul.mubr.msk.f32.vlgmr.msra.gmra.mrb[4].mxu0 %vm71_vm1, %v48_v8  ;;  %1718 = vmatmul.mubr.msk.f32.vlgmr.msra.gmra.mrb[4].mxu1 %vm71_vm1, %v48_v8 }
   0xf   :  { %1719 = vmatprep.subr.msk.mxu0 %vm75_vm0, %v69_v17  ;;  %1722 = vmatprep.subr.msk.mxu1 %vm75_vm0, %v70_v18  ;;  %v1725_v17 = vld [vmem:[%s2121_s3 + $0x8] sm:$0x3f] }
  0x10   :  { %1720 = vmatpush1.msk.msra.mxu0 %vm75_vm0, %v46_v15  ;;  %598 = vmatprep.mubr.f32.mxu0 %v1848_v2 }
  0x11   :  { %1723 = vmatpush1.msk.msra.mxu1 %vm75_vm0, %v47_v16  ;;  %669 = vmatprep.mubr.f32.mxu1 %v1848_v2 }
  0x12   :  { %1721 = vmatmul.mubr.msk.f32.vlgmr.msra.gmra.mrb[6].mxu0 %vm71_vm1, %v48_v8  ;;  %1724 = vmatmul.mubr.msk.f32.vlgmr.msra.gmra.mrb[6].mxu1 %vm71_vm1, %v48_v8 }
  0x13   :  { %52 = vperm.xlu0 %1834, %v49_v19   ;;  %810 = vmatprep.mubr.f32.mxu0 %v1848_v2 }
  0x14   :  { %1777 = vmatprep.subr.mxu1 %v1848_v2 }
  0x17   :  { %1068 = vperm.xlu0 %1834, %v1065_v20  }
  0x92   :  { %v1984_v21 = vpop.permute.xlu0 %52 }
  0xd9   :  { %v245_v22 = vpop.f32.mrb[0].mxu1  ;;  %v174_v23 = vpop.f32.mrb[0].mxu0 }
  0xda   :  { %v246_v24 = vadd.f32 %v245_v22, %v1984_v21  ;;  %v175_v25 = vadd.f32 %v174_v23, %v1984_v21  ;;  %v247_v26 = vpop.f32.mrb[1].mxu1  ;;  %v176_v27 = vpop.f32.mrb[1].mxu0 }
  0xdb   :  { %v248_v28 = vadd.f32 %v247_v26, %v1984_v21  ;;  %v177_v29 = vadd.f32 %v176_v27, %v1984_v21 }
  0xdc   :  { %v694_v30 = vmul.f32 0.01, %v246_v24  ;;  %vm678_vm2 = vcmp.ge.f32.partialorder %v246_v24, 0.0  ;;  %vm676_vm3 = vcmp.ge.f32.partialorder %v175_v25, 0.0  ;;  %v692_v31 = vmul.f32 0.01, %v175_v25 }
  0xdd   :  { %v387_v32 = vpop.f32.mrb[2].mxu1  ;;  %v316_v33 = vpop.f32.mrb[2].mxu0  ;;  %v695_v34 = vmul.f32 0.01, %v248_v28  ;;  %v693_v35 = vmul.f32 0.01, %v177_v29 }
  0xde   :  { %v388_v36 = vadd.f32 %v387_v32, %v1984_v21  ;;  %v389_v37 = vpop.f32.mrb[3].mxu1  ;;  %v318_v38 = vpop.f32.mrb[3].mxu0  ;;  %vm679_vm4 = vcmp.ge.f32.partialorder %v248_v28, 0.0  ;;  %vm677_vm5 = vcmp.ge.f32.partialorder %v177_v29, 0.0  ;;  %v317_v39 = vadd.f32 %v316_v33, %v1984_v21  ;;  %v732_v32 = vld [vmem:[%s2121_s3] sm:$0x3f] }
  0xdf   :  { %v1993_v40 = vadd.f32 %v389_v37, %v1984_v21  ;;  %v1996_v41 = vadd.f32 %v318_v38, %v1984_v21  ;;  %v710_v42 = vsel %vm678_vm2, %v246_v24, %v694_v30  ;;  %v1998_v43 = vsel %vm676_vm3, %v175_v25, %v692_v31  ;;  %v1732_v33 = vld [vmem:[%s2121_s3 + $0x10] sm:$0x3f] }
  0xe0   :  { %v711_v44 = vsel %vm679_vm4, %v248_v28, %v695_v34  ;;  %v709_v45 = vsel %vm677_vm5, %v177_v29, %v693_v35  ;;  %vm682_vm7 = vcmp.ge.f32.partialorder %v388_v36, 0.0  ;;  %v698_v46 = vmul.f32 0.01, %v388_v36  ;;  %v1736_v34 = vld [vmem:[%s2121_s3 + $0x18] sm:$0x3f]  ;;  %v1069_v35 = vpop.permute.xlu0 %1068  ;;  %s1852_s3 = smov 96  }
  0xe1   :  { %v458_v47 = vpop.f32.mrb[4].mxu0  ;;  %v529_v48 = vpop.f32.mrb[4].mxu1  ;;  %vm680_vm9 = vcmp.ge.f32.partialorder %v317_v39, 0.0  ;;  %v696_v49 = vmul.f32 0.01, %v317_v39  ;;  %vm683_vm10 = vcmp.ge.f32.partialorder %v1993_v40, 0.0 }
  0xe2   :  { %v459_v50 = vadd.f32 %v458_v47, %v1984_v21  ;;  %v530_v51 = vadd.f32 %v529_v48, %v1984_v21  ;;  %v460_v52 = vpop.f32.mrb[5].mxu0  ;;  %v531_v53 = vpop.f32.mrb[5].mxu1  ;;  %v699_v54 = vmul.f32 0.01, %v1993_v40  ;;  %v697_v55 = vmul.f32 0.01, %v1996_v41 }
  0xe3   :  { %v461_v56 = vadd.f32 %v460_v52, %v1984_v21  ;;  %v532_v57 = vadd.f32 %v531_v53, %v1984_v21  ;;  %v714_v18 = vsel %vm682_vm7, %v388_v36, %v698_v46  ;;  %v712_v19 = vsel %vm680_vm9, %v317_v39, %v696_v49  ;;  %v1740_v46 = vld [vmem:[%s2123_s5 + $0x8] sm:$0x3f]  ;;  %v1080_v48 = vld [vmem:[%s2123_s5] sm:$0x3f]  ;;  %v1748_v52 = vld [vmem:[%s2123_s5 + $0x18] sm:$0x3f] }
  0xe4   :  { %vm684_vm11 = vcmp.ge.f32.partialorder %v459_v50, 0.0  ;;  %v700_v60 = vmul.f32 0.01, %v459_v50  ;;  %vm686_vm12 = vcmp.ge.f32.partialorder %v530_v51, 0.0  ;;  %v702_v61 = vmul.f32 0.01, %v530_v51 }
  0xe5   :  { %v600_v58 = vpop.f32.mrb[6].mxu0  ;;  %v671_v59 = vpop.f32.mrb[6].mxu1  ;;  %vm685_vm13 = vcmp.ge.f32.partialorder %v461_v56, 0.0  ;;  %v701_v62 = vmul.f32 0.01, %v461_v56  ;;  %vm687_vm14 = vcmp.ge.f32.partialorder %v532_v57, 0.0  ;;  %v715_v28 = vsel %vm683_vm10, %v1993_v40, %v699_v54 }
  0xe6   :  { %v703_v63 = vmul.f32 0.01, %v532_v57  ;;  %v716_v0 = vsel %vm684_vm11, %v459_v50, %v700_v60  ;;  %v718_v1 = vsel %vm686_vm12, %v530_v51, %v702_v61  ;;  %v601_v3 = vadd.f32 %v600_v58, %v1984_v21  ;;  %v602_v5 = vpop.f32.mrb[7].mxu0  ;;  %v673_v6 = vpop.f32.mrb[7].mxu1  ;;  %v1745_v50 = vld [vmem:[%s2123_s5 + $0x10] sm:$0x3f] }
  0xe7   :  { %v672_v4 = vadd.f32 %v671_v59, %v1984_v21  ;;  %v724_v7 = vmax.f32 %v1998_v43, %v716_v0  ;;  %v726_v8 = vmax.f32 %v710_v42, %v718_v1  ;;  %v717_v9 = vsel %vm685_vm13, %v461_v56, %v701_v62  ;;  %s1854_s5 = smov 112  }
  0xe8   :  { %v719_v10 = vsel %vm687_vm14, %v532_v57, %v703_v63  ;;  %v725_v11 = vmax.f32 %v709_v45, %v717_v9  ;;  %vm688_vm15 = vcmp.ge.f32.partialorder %v601_v3, 0.0  ;;  %v704_v13 = vmul.f32 0.01, %v601_v3  ;;  %v1396_v45 = vld [vmem:[%s2122_s6] sm:$0x3f] }
  0xe9   :  { %v727_v12 = vmax.f32 %v711_v44, %v719_v10  ;;  %vm690_vm0 = vcmp.ge.f32.partialorder %v672_v4, 0.0  ;;  %v706_v14 = vmul.f32 0.01, %v672_v4  ;;  %v603_v15 = vadd.f32 %v602_v5, %v1984_v21  ;;  %v1585_v5 = vld [vmem:[%s2125_s8] sm:$0xff]  ;;  %v1586_v10 = vld [vmem:[%s2125_s8 + $0x8] sm:$0xff] }
  0xea   :  { %v674_v16 = vadd.f32 %v673_v6, %v1984_v21  ;;  %vm681_vm1 = vcmp.ge.f32.partialorder %v1996_v41, 0.0  ;;  %v720_v20 = vsel %vm688_vm15, %v601_v3, %v704_v13  ;;  %vm1850_vm4 = vmmov 0   ;;  %v1411_v13 = vld [vmem:[%s2126_s7] sm:$0xff] }
  0xeb   :  { %1726 = vmatprep.subr.msk.mxu0 %vm739_vm6, %v727_v12  ;;  %v728_v22 = vmax.f32 %v712_v19, %v720_v20  ;;  %v722_v23 = vsel %vm690_vm0, %v672_v4, %v706_v14  ;;  %vm689_vm2 = vcmp.ge.f32.partialorder %v603_v15, 0.0  ;;  %v705_v24 = vmul.f32 0.01, %v603_v15  ;;  %1779 = vmatprep.mubr.msk.f32.mxu1 %vm1850_vm4, %v1848_v2  ;;  %v1752_v12 = vld [vmem:[%s2126_s7 + $0x18] sm:$0xff]  ;;  %v1412_v14 = vld [vmem:[%s2126_s7 + $0x8] sm:$0xff] }
  0xec   :  { %1727 = vmatpush1.msk.msra.mxu0 %vm739_vm6, %v726_v8  ;;  %v730_v21 = vmax.f32 %v714_v18, %v722_v23  ;;  %vm691_vm3 = vcmp.ge.f32.partialorder %v674_v16, 0.0  ;;  %v707_v25 = vmul.f32 0.01, %v674_v16  ;;  %v713_v26 = vsel %vm681_vm1, %v1996_v41, %v697_v55 }
  0xed   :  { %1728 = vmatmul.mubr.msk.f32.vlgmr.msra.gmra.mrb[8].mxu0 %vm735_vm8, %v1725_v17  ;;  %1729 = vmatprep.subr.msk.mxu0 %vm739_vm6, %v725_v11  ;;  %v721_v27 = vsel %vm689_vm2, %v603_v15, %v705_v24  ;;  %v16_v53 = vstv %s2124_s10  ;;  %v1856_v15 = vmov 0.0|0.0  }
  0xee   :  { %1730 = vmatpush1.msk.msra.mxu0 %vm739_vm6, %v724_v7  ;;  %890 = vmatprep.mubr.f32.mxu0 %v1848_v2  ;;  %v729_v29 = vmax.f32 %v713_v26, %v721_v27  ;;  %v723_v30 = vsel %vm691_vm3, %v674_v16, %v707_v25  ;;  %17 = vst [vmem:[#allocation2] sm:$0x1] %v16_v53  ;;  %v1751_v7 = vld [vmem:[%s2126_s7 + $0x10] sm:$0xff]  ;;  %v1605_v27 = vld [vmem:[%s2127_s9] sm:$0x1] }
  0xef   :  { %v731_v31 = vmax.f32 %v715_v28, %v723_v30  ;;  %v1612_v28 = vlaneseq }
  0xf0   :  { %1733 = vmatprep.subr.msk.mxu0 %vm739_vm6, %v729_v29 }
  0xf1   :  { %v1613_v29 = vshrl.u32 %v1612_v28, 7 }
  0xf3   :  { %v1614_v30 = vsub.s32 0, %v1613_v29 }
  0xf5   :  { %1731 = vmatmul.mubr.msk.f32.vlgmr.msra.gmra.mrb[8].mxu0 %vm735_vm8, %v732_v32  ;;  %v1606_v6 = vld [vmem:[#allocation2] sm:$0x1] }
  0xf6   :  { %1734 = vmatpush1.msk.msra.mxu0 %vm739_vm6, %v728_v22  ;;  %972 = vmatprep.mubr.f32.mxu0 %v1848_v2 }
  0xf7   :  { %1737 = vmatprep.subr.msk.mxu0 %vm739_vm6, %v731_v31 }
  0xfd   :  { %1735 = vmatmul.mubr.msk.f32.vlgmr.msra.gmra.mrb[8].mxu0 %vm735_vm8, %v1732_v33 }
  0xfe   :  { %1738 = vmatpush1.msk.msra.mxu0 %vm739_vm6, %v730_v21  ;;  %1056 = vmatprep.mubr.f32.mxu0 %v1848_v2 }
 0x105   :  { %1739 = vmatmul.mubr.msk.f32.vlgmr.msra.gmra.mrb[8].mxu0 %vm735_vm8, %v1736_v34 }
 0x106   :  { %1799 = vmatprep.mubr.msk.f32.mxu0 %vm735_vm8, %v1751_v7 }
 0x1d8   :  { %v1058_v36 = vpop.f32.mrb[8].mxu0 }
 0x1d9   :  { %v1071_v37 = vadd.f32 %v1069_v35, %v1058_v36  ;;  %v1060_v38 = vpop.f32.mrb[9].mxu0 }
 0x1da   :  { %v1072_v39 = vadd.f32 %v1069_v35, %v1060_v38 }
 0x1db   :  { %vm1073_vm5 = vcmp.ge.f32.partialorder %v1071_v37, 0.0  ;;  %v1075_v40 = vmul.f32 0.01, %v1071_v37 }
 0x1dc   :  { %vm1074_vm7 = vcmp.ge.f32.partialorder %v1072_v39, 0.0  ;;  %v1076_v41 = vmul.f32 0.01, %v1072_v39 }
 0x1dd   :  { %v1077_v42 = vsel %vm1073_vm5, %v1071_v37, %v1075_v40 }
 0x1de   :  { %v1078_v43 = vsel %vm1074_vm7, %v1072_v39, %v1076_v41 }
 0x1df   :  { %v1079_v44 = vmax.f32 %v1077_v42, %v1078_v43 }
 0x1e1   :  { %1318 = vrot.lane.b32.xlu0 %v1079_v44, %s1851_s24  ;;  %1084 = vrot.lane.b32.xlu1 %v1079_v44, %s1852_s3 }
 0x1e5   :  { %1238 = vrot.lane.b32.xlu1 %v1079_v44, %s1853_s25 }
 0x1e9   :  { %1399 = vperm.xlu1 %1835, %v1396_v45  }
 0x253   :  { %v1085_v47 = vpop.permute.xlu1 %1084  ;;  %v1319_v51 = vpop.permute.xlu0 %1318 }
 0x254   :  { %1778 = vmatpush3.msk.msra.mxu1 %vm739_vm6, %v1085_v47 }
 0x255   :  { %1780 = vmatmul.mubr.msk.f32.vlgmr.msra.gmra.mrb[8].mxu1 %vm735_vm8, %v1740_v46  ;;  %1782 = vmatprep.subr.mxu1 %v1848_v2 }
 0x256   :  { %1783 = vmatpush3.msk.msra.mxu1 %vm739_vm6, %v1079_v44  ;;  %1784 = vmatprep.mubr.msk.f32.mxu1 %vm1850_vm4, %v1848_v2 }
 0x257   :  { %v1239_v49 = vpop.permute.xlu1 %1238  ;;  %1787 = vmatprep.subr.mxu1 %v1848_v2 }
 0x259   :  { %1785 = vmatmul.mubr.msk.f32.vlgmr.msra.gmra.mrb[10].mxu1 %vm735_vm8, %v1080_v48 }
 0x25a   :  { %1788 = vmatpush3.msk.msra.mxu1 %vm739_vm6, %v1239_v49  ;;  %1789 = vmatprep.mubr.msk.f32.mxu1 %vm1850_vm4, %v1848_v2 }
 0x25b   :  { %1792 = vmatprep.subr.mxu1 %v1848_v2 }
 0x25d   :  { %1790 = vmatmul.mubr.msk.f32.vlgmr.msra.gmra.mrb[12].mxu1 %vm735_vm8, %v1745_v50 }
 0x25e   :  { %1793 = vmatpush3.msk.msra.mxu1 %vm739_vm6, %v1319_v51  ;;  %1794 = vmatprep.mubr.msk.f32.mxu1 %vm1850_vm4, %v1848_v2 }
 0x25f   :  { %1814 = vmatprep.subr.bf16.mxu1 %v1856_v15 }
 0x261   :  { %1795 = vmatmul.mubr.msk.f32.vlgmr.msra.gmra.mrb[14].mxu1 %vm735_vm8, %v1748_v52 }
 0x262   :  { %1811 = vmatprep.mubr.msk.f32.mxu1 %vm1850_vm4, %v1848_v2 }
 0x268   :  { %v1400_v63 = vpop.permute.xlu1 %1399 }
 0x328   :  { %v1157_v54 = vpop.f32.mrb[8].mxu1 }
 0x329   :  { %v1781_v55 = vpop.f32.mrb[9].mxu1 }
 0x32c   :  { %v1232_v56 = vpop.f32.mrb[10].mxu1 }
 0x32d   :  { %v1233_v57 = vadd.f32 %v1232_v56, %v1157_v54  ;;  %v1786_v58 = vpop.f32.mrb[11].mxu1 }
 0x330   :  { %v1311_v59 = vpop.f32.mrb[12].mxu1 }
 0x331   :  { %v1315_v60 = vadd.f32 %v1311_v59, %v1233_v57  ;;  %v1791_v61 = vpop.f32.mrb[13].mxu1 }
 0x334   :  { %v1391_v62 = vpop.f32.mrb[14].mxu1 }
 0x335   :  { %v1395_v0 = vadd.f32 %v1391_v62, %v1315_v60  ;;  %v1796_v1 = vpop.f32.mrb[15].mxu1 }
 0x337   :  { %v1402_v3 = vadd.f32 %v1400_v63, %v1395_v0 }
 0x339   :  { %v1404_v4 = vmul.f32 0.01, %v1402_v3  ;;  %vm1403_vm9 = vcmp.ge.f32.partialorder %v1402_v3, 0.0 }
 0x33b   :  { %v1405_v2 = vsel %vm1403_vm9, %v1402_v3, %v1404_v4 }
 0x33c   :  { %1407 = vrot.lane.b32.xlu0 %v1405_v2, %s1854_s5 }
 0x340   :  { %1589 = vperm.xlu0 %1834, %v1585_v5  }
 0x344   :  { %1609 = vperm.xlu0 %1834, %v1606_v6  }
 0x3ae   :  { %v1408_v8 = vpop.permute.xlu0 %1407 }
 0x3af   :  { %v1410_v9 = vmax.f32 %v1405_v2, %v1408_v8 }
 0x3b1   :  { %1417 = vrot.lane.b32.xlu1 %v1410_v9, %s1855_s4 }
 0x3b5   :  { %1594 = vperm.xlu1 %1835, %v1586_v10  }
 0x3bf   :  { %v1590_v18 = vpop.permute.xlu0 %1589 }
 0x3c3   :  { %v1610_v31 = vpop.permute.xlu0 %1609 }
 0x3c4   :  { %v1615_v32 = vrot.slane %v1610_v31, %v1614_v30 }
 0x423   :  { %v1418_v11 = vpop.permute.xlu1 %1417 }
 0x424   :  { %1797 = vmatprep.subr.msk.mxu0 %vm739_vm6, %v1418_v11 }
 0x425   :  { %1798 = vmatpush3.msk.msra.mxu0 %vm739_vm6, %v1418_v11 }
 0x426   :  { %1800 = vmatmul.mubr.msk.f32.vlgmr.msra.gmra.mrb[10].mxu0 %vm735_vm8, %v1752_v12  ;;  %1802 = vmatprep.subr.msk.mxu0 %vm739_vm6, %v1410_v9 }
 0x427   :  { %1803 = vmatpush3.msk.msra.mxu0 %vm739_vm6, %v1410_v9  ;;  %1804 = vmatprep.mubr.msk.f32.mxu0 %vm735_vm8, %v1411_v13  ;;  %vm1616_vm6 = vcmask 130048  }
 0x42e   :  { %1805 = vmatmul.mubr.msk.f32.vlgmr.msra.gmra.mrb[10].mxu0 %vm735_vm8, %v1412_v14  ;;  %vm1695_vm8 = vcmask 57344  }
 0x434   :  { %v1595_v16 = vpop.permute.xlu1 %1594 }
 0x501   :  { %v1806_v17 = vpop.f32.mrb[10].mxu0 }
 0x502   :  { %v1598_v19 = vadd.f32 %v1806_v17, %v1595_v16  ;;  %v1576_v20 = vpop.f32.mrb[11].mxu0 }
 0x503   :  { %v1597_v22 = vadd.f32 %v1590_v18, %v1576_v20 }
 0x504   :  { %vm1600_vm10 = vcmp.ge.f32.partialorder %v1598_v19, 0.0  ;;  %v1602_v23 = vmul.f32 0.01, %v1598_v19 }
 0x505   :  { %vm1599_vm11 = vcmp.ge.f32.partialorder %v1597_v22, 0.0  ;;  %v1601_v24 = vmul.f32 0.01, %v1597_v22 }
 0x506   :  { %v1604_v21 = vsel %vm1600_vm10, %v1598_v19, %v1602_v23 }
 0x507   :  { %v1603_v25 = vsel %vm1599_vm11, %v1597_v22, %v1601_v24 }
 0x508   :  { %v1815_v26 = vpack.c.bf16 %v1604_v21, %v1603_v25 }
 0x50a   :  { %1816 = vmatpush3.bf16.msra.mxu1 %v1815_v26 }
 0x50d   :  { %1812 = vmatmul.mubr.msk.f32.vlgmr.msra.gmra.mrb[16].mxu1 %vm1616_vm6, %v1605_v27 }
 0x5e0   :  { %v1686_v33 = vpop.f32.mrb[16].mxu1 }
 0x5e1   :  { %v1687_v34 = vadd.f32 %v1686_v33, %v1615_v32  ;;  %v1813_v35 = vpop.f32.mrb[17].mxu1 }
 0x5e3   :  { %v1690_v36 = vsub.f32 0.0, %v1687_v34 }
 0x5e5   :  { %v1691_v37 = vmul.f32 1.442695, %v1690_v36 }
 0x5e7   :  { %1844 = vpow2.f32 %v1691_v37 }
 0x5f1   :  { %v1845_v38 = vpop.eup %1844 }
 0x5f2   :  { %v1693_v39 = vadd.f32 1.0, %v1845_v38 }
 0x5f4   :  { %1846 = vrcp.f32 %v1693_v39 }
 0x5fe   :  { %v1847_v40 = vpop.eup %1846 }
 0x5ff   :  { %1696 = vst.msk [vmem:[%s2128_s11] sm:$0x1] %vm1695_vm8, %v1847_v40 }

</bundles_post_ra>
